<compile_context>
chip_gen: v7x
topology: tpu7x:2x2x1
jax: 0.10.0
libtpu: 0.0.40
codegen_flags: <defaults>
</compile_context>

<pallas_src>
import functools

import jax
import jax.numpy as jnp
from jax.experimental import pallas as pl
from jax.experimental.pallas import tpu as pltpu


def _cdiv(a, b):
    return -(-a // b)


def _extract_kernel(x_ref, w1_ref, b1_ref, w2_ref, probs_ref, energy_ref,
                    *, mxu_dtype):
    tb, C, H = x_ref.shape

    # One tall (tb*C, H) x (H, H) MXU matmul per grid step.
    # TODO(synk): for C not a multiple of 8 this reshape forces a VMEM
    #             relayout; flatten to (B*C, H) in the wrapper for that case.
    x = x_ref[...].reshape(tb * C, H)
    if mxu_dtype is not None and x.dtype != mxu_dtype:
        # Only hit when x arrives f32; bf16 x passes straight to the MXU.
        x = x.astype(mxu_dtype)
    w1 = w1_ref[...]                       # already cast once in the wrapper

    h = jnp.dot(x, w1, preferred_element_type=jnp.float32) + b1_ref[...]
    h = jnp.tanh(h)                        # f32 on the EUP

    # Energy head: broadcast-mul on the VPU, lane reduce on the XLU.
    energies = jnp.sum(h.reshape(tb, C, H) * w2_ref[...], axis=-1)   # (tb, C)

    # Softmax over candidates (last / lane axis) -> lane-dense outputs.
    m = jnp.max(energies, axis=-1, keepdims=True)
    p = jnp.exp(energies - m)
    p = p / jnp.sum(p, axis=-1, keepdims=True)

    energy_ref[...] = energies.astype(energy_ref.dtype)
    probs_ref[...] = p.astype(probs_ref.dtype)


def _choose_batch_tiling(B, C, H, x_itemsize, w1_itemsize,
                         target_block_bytes, vmem_budget_bytes):
    """Pick (tb, n_steps): batch rows per grid step and number of steps."""
    # Per-batch-row VMEM: double-buffered x block + f32 hidden temp
    # + double-buffered f32 probs/energies blocks.
    per_row = C * H * (2 * x_itemsize + 4) + 2 * 2 * C * 4
    # Resident across steps: w1 (constant index_map) + b1/w2 + slack.
    resident = H * H * w1_itemsize + 4 * H * 4 + (512 << 10)
    budget_rows = max(1, (vmem_budget_bytes - resident) // per_row)

    tb = max(1, target_block_bytes // (C * H * x_itemsize))
    tb = min(tb, budget_rows)
    if B <= tb:
        return B, 1                       # whole batch resident in one step

    # Multi-step: the lane-dense (tb, C) output block needs tb % 8 == 0.
    tb = max(8, (tb // 8) * 8)
    if tb >= B:
        return B, 1
    n_steps = _cdiv(B, tb)
    if n_steps > 1 and n_steps % 2:
        # Balance work across v7x's two TensorCores (grid axis is "parallel").
        n_even = n_steps + 1
        tb_even = max(8, _cdiv(_cdiv(B, n_even), 8) * 8)
        tb, n_steps = tb_even, _cdiv(B, tb_even)
    return tb, n_steps


def compexp_extract(x, w1, b1, w2, *, mxu_dtype=None,
                    target_block_bytes=4 << 20,
                    vmem_budget_bytes=24 << 20):
    """Returns (probs, energies), each of shape (B, C), float32.

    x may be f32 or bf16; passing bf16 x halves the dominant HBM stream.
    mxu_dtype=jnp.bfloat16 uses bf16 MXU operands with f32 accumulation
    (useful on all generations once H is large enough to be compute-bound).
    """
    B, C, H = x.shape

    if mxu_dtype is not None and w1.dtype != mxu_dtype:
        # Resident weight: cast once here (read from HBM once, stays resident
        # via its constant index_map) instead of re-packing it every step.
        w1 = w1.astype(mxu_dtype)

    tb, n_steps = _choose_batch_tiling(
        B, C, H,
        jnp.dtype(x.dtype).itemsize, jnp.dtype(w1.dtype).itemsize,
        target_block_bytes, vmem_budget_bytes)

    kernel = functools.partial(_extract_kernel, mxu_dtype=mxu_dtype)

    # No padding of x: a ragged final batch block is handled by Pallas'
    # masked partial-block reads/writes (no extra HBM copy of x).
    probs, energies = pl.pallas_call(
        kernel,
        out_shape=(
            jax.ShapeDtypeStruct((B, C), jnp.float32),   # probs (lane-dense)
            jax.ShapeDtypeStruct((B, C), jnp.float32),   # energies
        ),
        grid_spec=pltpu.PrefetchScalarGridSpec(
            num_scalar_prefetch=0,
            grid=(n_steps,),
            in_specs=[
                pl.BlockSpec((tb, C, H), lambda b: (b, 0, 0)),   # x slab
                pl.BlockSpec((H, H), lambda b: (0, 0)),          # W1 (resident)
                pl.BlockSpec((1, H), lambda b: (0, 0)),          # b1 (resident)
                pl.BlockSpec((1, H), lambda b: (0, 0)),          # w2 (resident)
            ],
            out_specs=[
                pl.BlockSpec((tb, C), lambda b: (b, 0)),
                pl.BlockSpec((tb, C), lambda b: (b, 0)),
            ],
        ),
        compiler_params=pltpu.CompilerParams(
            dimension_semantics=("parallel",),
            # Raise v5e's 16 MiB default scoped limit; 32 MiB is the default
            # on v6e/v7x and safely under every generation's physical VMEM.
            vmem_limit_bytes=32 << 20,
        ),
    )(x, w1, b1, w2)

    return probs, energies


def _reference(x, w1, b1, w2):
    x32 = x.astype(jnp.float32)
    w32 = w1.astype(jnp.float32)
    h = jnp.tanh(jnp.einsum("bch,hk->bck", x32, w32) + b1)
    e = jnp.sum(h * w2, axis=-1)
    p = jax.nn.softmax(e, axis=-1)
    return p, e


if __name__ == "__main__":
    B, C, H = 2, 8, 128   # batch, candidate segments, hidden size

    key = jax.random.PRNGKey(0)
    kx, k1, k2, k3 = jax.random.split(key, 4)

    x = jax.random.normal(kx, (B, C, H), dtype=jnp.float32)
    w1 = jax.random.normal(k1, (H, H), dtype=jnp.float32) * (1.0 / jnp.sqrt(H))
    b1 = jax.random.normal(k2, (1, H), dtype=jnp.float32) * 0.01
    w2 = jax.random.normal(k3, (1, H), dtype=jnp.float32) * (1.0 / jnp.sqrt(H))

    ref_p, ref_e = _reference(x, w1, b1, w2)

    # ---- f32 MXU path: exact correctness check --------------------------
    probs, energies = compexp_extract(x, w1, b1, w2, mxu_dtype=None)
    jax.block_until_ready((probs, energies))
    assert probs.shape == (B, C) and energies.shape == (B, C)
    assert jnp.allclose(probs, ref_p, atol=1e-5, rtol=1e-5)
    assert jnp.allclose(energies, ref_e, atol=1e-4, rtol=1e-4)

    # ---- bf16 x in HBM + bf16 MXU operands (f32 accumulation) -----------
    # x is supplied already in bf16 (no in-kernel repack of x); loose
    # tolerances vs the f32 reference because the operands are rounded.
    x_bf = x.astype(jnp.bfloat16)
    probs_bf, energies_bf = compexp_extract(x_bf, w1, b1, w2,
                                            mxu_dtype=jnp.bfloat16)
    jax.block_until_ready((probs_bf, energies_bf))
    assert jnp.allclose(energies_bf, ref_e, atol=1e-1, rtol=1e-1)
    assert jnp.allclose(probs_bf, ref_p, atol=2e-2, rtol=2e-2)

    # ---- multi-step, ragged-batch path (no padding copy of x) -----------
    B2 = 50
    x2 = jax.random.normal(jax.random.PRNGKey(1), (B2, C, H), dtype=jnp.float32)
    ref_p2, ref_e2 = _reference(x2, w1, b1, w2)
    # Force a small per-step tile so the grid has several steps and a ragged
    # final block (exercises the masked partial-block path).
    probs2, energies2 = compexp_extract(x2, w1, b1, w2, mxu_dtype=None,
                                        target_block_bytes=16 << 10)
    jax.block_until_ready((probs2, energies2))
    assert probs2.shape == (B2, C) and energies2.shape == (B2, C)
    assert jnp.allclose(probs2, ref_p2, atol=1e-5, rtol=1e-5)
    assert jnp.allclose(energies2, ref_e2, atol=1e-4, rtol=1e-4)

    print("KERNEL_OK")
</pallas_src>

<mosaic_0001>
module attributes {stable_mosaic.version = 11 : i64} {
  func.func @_extract_kernel(%arg0: i32, %arg1: memref<2x8x128xf32, #tpu.memory_space<vmem>>, %arg2: memref<128x128xf32, #tpu.memory_space<vmem>>, %arg3: memref<1x128xf32, #tpu.memory_space<vmem>>, %arg4: memref<1x128xf32, #tpu.memory_space<vmem>>, %arg5: memref<2x8xf32, #tpu.memory_space<vmem>>, %arg6: memref<2x8xf32, #tpu.memory_space<vmem>>) attributes {dimension_semantics = [#tpu.dimension_semantics<parallel>], iteration_bounds = array<i64: 1>, scalar_prefetch = 0 : i64, scratch_operands = 0 : i64, tpu.core_type = #tpu.core_type<tc>, window_params = [{transform_indices = @transform_0, window_bounds = array<i64: 2, 8, 128>}, {pipeline_mode = #tpu.pipeline_mode<synchronous>, transform_indices = @transform_1, window_bounds = array<i64: 128, 128>}, {pipeline_mode = #tpu.pipeline_mode<synchronous>, transform_indices = @transform_2, window_bounds = array<i64: 1, 128>}, {pipeline_mode = #tpu.pipeline_mode<synchronous>, transform_indices = @transform_3, window_bounds = array<i64: 1, 128>}, {transform_indices = @transform_4, window_bounds = array<i64: 2, 8>}, {transform_indices = @transform_5, window_bounds = array<i64: 2, 8>}]} {
    %c0 = arith.constant 0 : index
    %c0_0 = arith.constant 0 : index
    %c0_1 = arith.constant 0 : index
    %0 = vector.load %arg1[%c0, %c0_0, %c0_1] : memref<2x8x128xf32, #tpu.memory_space<vmem>>, vector<2x8x128xf32>
    %1 = vector.shape_cast %0 : vector<2x8x128xf32> to vector<16x128xf32>
    %c0_2 = arith.constant 0 : index
    %c0_3 = arith.constant 0 : index
    %2 = vector.load %arg2[%c0_2, %c0_3] : memref<128x128xf32, #tpu.memory_space<vmem>>, vector<128x128xf32>
    %cst = arith.constant dense<0.000000e+00> : vector<16x128xf32>
    %3 = tpu.matmul %1, %2, %cst {dimension_numbers = #tpu.dot_dimension_numbers<[1], [0], [0], [1], [0, 0, 1, 1], [], []>} : vector<16x128xf32>, vector<128x128xf32>, vector<16x128xf32> -> vector<16x128xf32>
    %c0_4 = arith.constant 0 : index
    %c0_5 = arith.constant 0 : index
    %4 = vector.load %arg3[%c0_4, %c0_5] : memref<1x128xf32, #tpu.memory_space<vmem>>, vector<1x128xf32>
    %5 = vector.broadcast %4 : vector<1x128xf32> to vector<16x128xf32>
    %6 = arith.addf %3, %5 : vector<16x128xf32>
    %7 = math.tanh %6 : vector<16x128xf32>
    %8 = vector.shape_cast %7 : vector<16x128xf32> to vector<2x8x128xf32>
    %c0_6 = arith.constant 0 : index
    %c0_7 = arith.constant 0 : index
    %9 = vector.load %arg4[%c0_6, %c0_7] : memref<1x128xf32, #tpu.memory_space<vmem>>, vector<1x128xf32>
    %10 = vector.shape_cast %9 : vector<1x128xf32> to vector<1x1x128xf32>
    %11 = vector.broadcast %10 : vector<1x1x128xf32> to vector<2x8x128xf32>
    %12 = arith.mulf %8, %11 : vector<2x8x128xf32>
    %cst_8 = arith.constant dense<0.000000e+00> : vector<2x8xf32>
    %13 = vector.multi_reduction <add>, %12, %cst_8 [2] : vector<2x8x128xf32> to vector<2x8xf32>
    %cst_9 = arith.constant dense<0xFF800000> : vector<2xf32>
    %14 = vector.multi_reduction <maximumf>, %13, %cst_9 [1] : vector<2x8xf32> to vector<2xf32>
    %15 = vector.shape_cast %14 : vector<2xf32> to vector<2x1xf32>
    %16 = vector.broadcast %15 : vector<2x1xf32> to vector<2x8xf32>
    %17 = arith.subf %13, %16 : vector<2x8xf32>
    %18 = math.exp %17 : vector<2x8xf32>
    %cst_10 = arith.constant dense<0.000000e+00> : vector<2xf32>
    %19 = vector.multi_reduction <add>, %18, %cst_10 [1] : vector<2x8xf32> to vector<2xf32>
    %20 = vector.shape_cast %19 : vector<2xf32> to vector<2x1xf32>
    %21 = vector.broadcast %20 : vector<2x1xf32> to vector<2x8xf32>
    %22 = arith.divf %18, %21 : vector<2x8xf32>
    %c0_11 = arith.constant 0 : index
    %c0_12 = arith.constant 0 : index
    %23 = vector.load %arg6[%c0_11, %c0_12] : memref<2x8xf32, #tpu.memory_space<vmem>>, vector<2x8xf32>
    tpu.vector_store %arg6[%c0_11, %c0_12], %13 {strides = array<i32>} : memref<2x8xf32, #tpu.memory_space<vmem>>, vector<2x8xf32>,
    %c0_13 = arith.constant 0 : index
    %c0_14 = arith.constant 0 : index
    %24 = vector.load %arg5[%c0_13, %c0_14] : memref<2x8xf32, #tpu.memory_space<vmem>>, vector<2x8xf32>
    tpu.vector_store %arg5[%c0_13, %c0_14], %22 {strides = array<i32>} : memref<2x8xf32, #tpu.memory_space<vmem>>, vector<2x8xf32>,
    return
  }
  func.func @transform_0(%arg0: i32) -> (i32, i32, i32) {
    %c0_i32 = arith.constant 0 : i32
    %c0_i32_0 = arith.constant 0 : i32
    %c0_i32_1 = arith.constant 0 : i32
    return %arg0, %c0_i32, %c0_i32_0 : i32, i32, i32
  }
  func.func @transform_1(%arg0: i32) -> (i32, i32) {
    %c0_i32 = arith.constant 0 : i32
    %c0_i32_0 = arith.constant 0 : i32
    %c0_i32_1 = arith.constant 0 : i32
    return %c0_i32, %c0_i32_0 : i32, i32
  }
  func.func @transform_2(%arg0: i32) -> (i32, i32) {
    %c0_i32 = arith.constant 0 : i32
    %c0_i32_0 = arith.constant 0 : i32
    %c0_i32_1 = arith.constant 0 : i32
    return %c0_i32, %c0_i32_0 : i32, i32
  }
  func.func @transform_3(%arg0: i32) -> (i32, i32) {
    %c0_i32 = arith.constant 0 : i32
    %c0_i32_0 = arith.constant 0 : i32
    %c0_i32_1 = arith.constant 0 : i32
    return %c0_i32, %c0_i32_0 : i32, i32
  }
  func.func @transform_4(%arg0: i32) -> (i32, i32) {
    %c0_i32 = arith.constant 0 : i32
    %c0_i32_0 = arith.constant 0 : i32
    return %arg0, %c0_i32 : i32, i32
  }
  func.func @transform_5(%arg0: i32) -> (i32, i32) {
    %c0_i32 = arith.constant 0 : i32
    %c0_i32_0 = arith.constant 0 : i32
    return %arg0, %c0_i32 : i32, i32
  }
}

</mosaic_0001>

<bundles_post_ra>
// kernel: tpu_custom_call.1
= control target key start
LH: loop header
LB: loop body
LE: loop exit
PB: predicated region body
PF: predicated region fallthrough
CT: control target
= control target key end

     0   :  { %11 = vsyncpa [#allocation3], 0  ;;  %s596_s0 = inlined_call_operand.hbm [shape: f32[2,8,128], index: 0, kind: input, shape index: {}]   ;;  %s597_s1 = inlined_call_operand.hbm [shape: f32[128,128], index: 1, kind: input, shape index: {}]   ;;  %s598_s2 = inlined_call_operand.vmem [shape: f32[1,128], index: 2, kind: input, shape index: {}]   ;;  %s599_s3 = inlined_call_operand.vmem [shape: f32[1,128], index: 3, kind: input, shape index: {}]   ;;  %s600_s4 = inlined_call_operand.hbm [shape: f32[2,8], index: 4, kind: output, shape index: {0}]   ;;  %s601_s5 = inlined_call_operand.hbm [shape: f32[2,8], index: 5, kind: output, shape index: {1}]  }
   0x1   :  { %12 = vsyncpa [#allocation6], 0 }
   0x2   :  { %13 = vsyncpa [#allocation4], 0 }
   0x3   :  { %14 = vsyncpa [#allocation9], 0  ;;  %s490_s18 = smov [#allocation2]   ;;  %s394_s22 = scalar_lea.hbm %s596_s0, 256 }
   0x4   :  { %s20_s19 = sshll.u32 %s490_s18, 4  ;;  %p395_p0 = scmp.ne.s32.totalorder %s596_s0, %s394_s22  ;;  %s21_s19 = int_to_ptr.vmem [resolvable:$true] %s20_s19 }
   0x5   :  { %p398_p1 = scmp.lt.u32.totalorder %s394_s22, %s596_s0 }
   0x7   :  { %p400_p2 = pnand %p398_p1, %p395_p0 }
   0x9   :  { %403 = shalt.err (!%p400_p2)
}
   0xa   :  { %s404_s27 = scalar_lea.vmem %s21_s19, 256  ;;  %p409_p4 = scmp.lt.s32.totalorder %s21_s19, %s21_s19 }
   0xb   :  { %p405_p3 = scmp.ne.s32.totalorder %s21_s19, %s404_s27  ;;  %p410_p5 = scmp.lt.s32.totalorder %s404_s27, %s404_s27 }
   0xd   :  { %p411_p6 = por %p410_p5, %p409_p4 }
   0xf   :  { %p412_p7 = pnand %p411_p6, %p405_p3 }
  0x11   :  { %415 = shalt.err (!%p412_p7)
}
  0x12   :  { %s491_s28 = smov 128   ;;  %s492_s29 = smov 8  }
  0x13   :  { %26 = dma.hbm_to_vmem [thread:$0]  %s596_s0, 256, %s21_s19, [#allocation3], %s491_s28, %s491_s28, %s492_s29  }
  0x14   :  { %s493_s7 = smov [#allocation5]   ;;  %s416_s11 = scalar_lea.hbm %s597_s1, 2048 }
  0x15   :  { %s32_s8 = sshll.u32 %s493_s7, 4  ;;  %p417_p8 = scmp.ne.s32.totalorder %s597_s1, %s416_s11  ;;  %s33_s8 = int_to_ptr.vmem [resolvable:$true] %s32_s8 }
  0x16   :  { %p420_p9 = scmp.lt.u32.totalorder %s416_s11, %s597_s1 }
  0x18   :  { %p422_p10 = pnand %p420_p9, %p417_p8 }
  0x1a   :  { %425 = shalt.err (!%p422_p10)
}
  0x1b   :  { %s426_s16 = scalar_lea.vmem %s33_s8, 2048  ;;  %p431_p12 = scmp.lt.s32.totalorder %s33_s8, %s33_s8 }
  0x1c   :  { %p427_p11 = scmp.ne.s32.totalorder %s33_s8, %s426_s16  ;;  %p432_p13 = scmp.lt.s32.totalorder %s426_s16, %s426_s16 }
  0x1e   :  { %p433_p0 = por %p432_p13, %p431_p12 }
  0x20   :  { %p434_p1 = pnand %p433_p0, %p427_p11 }
  0x22   :  { %437 = shalt.err (!%p434_p1)
}
  0x23   :  { %38 = dma.hbm_to_vmem [thread:$0]  %s597_s1, 2048, %s33_s8, [#allocation6], %s491_s28, %s491_s28, %s492_s29  }
  0x24   :  { %482 = dma.done.wait [#allocation3], 256  }
  0x25   :  { %483 = vsyncadd [#allocation3], 4294967040 }
  0x26   :  { %484 = dma.done.wait [#allocation6], 2048  }
  0x27   :  { %485 = vsyncadd [#allocation6], 4294965248  ;;  %v51_v0 = vld [vmem:[#allocation5] sm:$0xff]  ;;  %v52_v1 = vld [vmem:[#allocation5 + $0x8] sm:$0xff]  ;;  %v166_v36 = vlaneseq  ;;  %vm176_vm0 = vcmask 1041409   ;;  %vm179_vm1 = vcmask 58368  }
  0x28   :  { %v53_v2 = vld [vmem:[#allocation5 + $0x10] sm:$0xff]  ;;  %v341_v3 = vpack.c.bf16 %v52_v1, %v51_v0  ;;  %v54_v4 = vld [vmem:[#allocation5 + $0x18] sm:$0xff]  ;;  %v55_v6 = vld [vmem:[#allocation5 + $0x20] sm:$0xff]  ;;  %v494_v46 = vmov 0  }
  0x29   :  { %v345_v5 = vpack.c.bf16 %v54_v4, %v53_v2  ;;  %v56_v7 = vld [vmem:[#allocation5 + $0x28] sm:$0xff]  ;;  %v49_v9 = vld [vmem:[#allocation2] sm:$0xff]  ;;  %v58_v11 = vld [vmem:[#allocation5 + $0x38] sm:$0xff]  ;;  %v167_v37 = vand.u32 127, %v166_v36  ;;  %v169_v38 = vshrl.u32 %v166_v36, 7  ;;  %381 = vset.pattern.permute.xlu0 %v494_v46  ;;  %380 = vset.pattern.permute.xlu1 %v494_v46 }
  0x2a   :  { %342 = vmatprep.subr.bf16.mxu0 %v341_v3  ;;  %v349_v8 = vpack.c.bf16 %v56_v7, %v55_v6  ;;  %v57_v10 = vld [vmem:[#allocation5 + $0x30] sm:$0xff]  ;;  %338 = vmatprep.mubr.f32.mxu0 %v49_v9  ;;  %v59_v13 = vld [vmem:[#allocation5 + $0x40] sm:$0xff]  ;;  %v60_v14 = vld [vmem:[#allocation5 + $0x48] sm:$0xff] }
  0x2b   :  { %344 = vmatpush3.bf16.msra.mxu0 %v341_v3  ;;  %v353_v12 = vpack.c.bf16 %v58_v11, %v57_v10  ;;  %v357_v15 = vpack.c.bf16 %v60_v14, %v59_v13  ;;  %v61_v16 = vld [vmem:[#allocation5 + $0x50] sm:$0xff]  ;;  %v62_v17 = vld [vmem:[#allocation5 + $0x58] sm:$0xff]  ;;  %v63_v19 = vld [vmem:[#allocation5 + $0x60] sm:$0xff]  ;;  %v557_v40 = vsub.s32 %v167_v37, %v169_v38  ;;  %v186_v47 = vsub.s32 0, %v169_v38 }
  0x2c   :  { %346 = vmatprep.subr.bf16.mxu0 %v345_v5  ;;  %v361_v18 = vpack.c.bf16 %v62_v17, %v61_v16  ;;  %v64_v20 = vld [vmem:[#allocation5 + $0x68] sm:$0xff]  ;;  %v65_v22 = vld [vmem:[#allocation5 + $0x70] sm:$0xff]  ;;  %v66_v23 = vld [vmem:[#allocation5 + $0x78] sm:$0xff]  ;;  %v190_v48 = vsub.s32 1, %v169_v38 }
  0x2d   :  { %v365_v21 = vpack.c.bf16 %v64_v20, %v63_v19  ;;  %v369_v24 = vpack.c.bf16 %v66_v23, %v65_v22  ;;  %v50_v25 = vld [vmem:[#allocation2 + $0x8] sm:$0xff]  ;;  %v286_v26 = vld [vmem:[%s598_s2] ss:$0 sm:$0xff]  ;;  %s495_s2 = smov [#allocation8]  }
  0x2e   :  { %v287_v31 = vld [vmem:[%s599_s3] ss:$0 sm:$0xff]  ;;  %s272_s3 = sshll.u32 %s495_s2, 4  ;;  %s273_s3 = int_to_ptr.vmem [resolvable:$true] %s272_s3 }
  0x2f   :  { %348 = vmatpush3.bf16.msra.mxu0 %v345_v5  ;;  %s438_s21 = scalar_lea.vmem %s273_s3, 32  ;;  %p443_p3 = scmp.lt.s32.totalorder %s273_s3, %s273_s3 }
  0x30   :  { %350 = vmatprep.subr.bf16.mxu0 %v349_v8  ;;  %p439_p2 = scmp.ne.s32.totalorder %s273_s3, %s438_s21  ;;  %p444_p4 = scmp.lt.s32.totalorder %s438_s21, %s438_s21 }
  0x32   :  { %p445_p5 = por %p444_p4, %p443_p3 }
  0x33   :  { %352 = vmatpush3.bf16.msra.mxu0 %v349_v8 }
  0x34   :  { %354 = vmatprep.subr.bf16.mxu0 %v353_v12  ;;  %p446_p6 = pnand %p445_p5, %p439_p2 }
  0x37   :  { %356 = vmatpush3.bf16.msra.mxu0 %v353_v12 }
  0x38   :  { %358 = vmatprep.subr.bf16.mxu0 %v357_v15 }
  0x3b   :  { %360 = vmatpush3.bf16.msra.mxu0 %v357_v15 }
  0x3c   :  { %362 = vmatprep.subr.bf16.mxu0 %v361_v18 }
  0x3f   :  { %364 = vmatpush3.bf16.msra.mxu0 %v361_v18 }
  0x40   :  { %366 = vmatprep.subr.bf16.mxu0 %v365_v21 }
  0x43   :  { %368 = vmatpush3.bf16.msra.mxu0 %v365_v21 }
  0x44   :  { %370 = vmatprep.subr.bf16.mxu0 %v369_v24 }
  0x47   :  { %372 = vmatpush3.bf16.msra.mxu0 %v369_v24 }
  0x4a   :  { %339 = vmatmul.mubr.f32.vlgmr.msra.gmra.mrb[0].mxu0 %v50_v25 }
 0x11d   :  { %v340_v27 = vpop.f32.mrb[0].mxu0 }
 0x11e   :  { %v140_v28 = vpop.f32.mrb[1].mxu0  ;;  %v146_v29 = vadd.f32 %v340_v27, %v286_v26 }
 0x11f   :  { %v141_v30 = vadd.f32 %v286_v26, %v140_v28 }
 0x121   :  { %382 = vtanh.f32 %v141_v30 }
 0x122   :  { %384 = vtanh.f32 %v146_v29 }
 0x12b   :  { %v383_v32 = vpop.eup %382 }
 0x12c   :  { %v158_v33 = vmul.f32 %v383_v32, %v287_v31  ;;  %v385_v34 = vpop.eup %384 }
 0x12d   :  { %v159_v35 = vmul.f32 %v385_v34, %v287_v31 }
 0x12e   :  { %160 = vadd.xlane.f32.xlu0 %v158_v33 }
 0x132   :  { %162 = vadd.xlane.f32.xlu0 %v159_v35 }
 0x1bb   :  { %v161_v39 = vpop.xlane.xlu0 %160 }
 0x1bc   :  { %v171_v42 = vrot.slane %v161_v39, %v557_v40 }
 0x1bf   :  { %v163_v41 = vpop.xlane.xlu0 %162 }
 0x1c0   :  { %v175_v43 = vrot.slane %v163_v41, %v557_v40 }
 0x1c2   :  { %v177_v44 = vsel %vm176_vm0, %v175_v43, %v171_v42 }
 0x1c3   :  { %v180_v45 = vsel %vm179_vm1, %v177_v44, -inf  ;;  %236 = vst.msk [vmem:[#allocation8] sm:$0x3] %vm179_vm1, %v177_v44 }
 0x1c4   :  { %181 = vmax.xlane.f32.xlu1 %v180_v45 }
 0x251   :  { %v182_v49 = vpop.xlane.xlu1 %181 }
 0x252   :  { %v187_v50 = vrot.slane %v182_v49, %v186_v47  ;;  %v191_v51 = vrot.slane %v182_v49, %v190_v48 }
 0x254   :  { %v194_v52 = vsub.f32 %v161_v39, %v187_v50  ;;  %v195_v53 = vsub.f32 %v163_v41, %v191_v51 }
 0x256   :  { %v196_v54 = vmul.f32 1.442695, %v194_v52  ;;  %v198_v55 = vmul.f32 1.442695, %v195_v53 }
 0x258   :  { %386 = vpow2.f32 %v196_v54 }
 0x259   :  { %388 = vpow2.f32 %v198_v55 }
 0x262   :  { %v387_v56 = vpop.eup %386 }
 0x263   :  { %v389_v57 = vpop.eup %388  ;;  %203 = vperm.xlu1 %380, %v387_v56  }
 0x264   :  { %206 = vperm.xlu0 %381, %v389_v57  }
 0x2e2   :  { %v204_v58 = vpop.permute.xlu1 %203 }
 0x2e3   :  { %v207_v59 = vpop.permute.xlu0 %206  ;;  %v211_v60 = vrot.slane %v204_v58, %v557_v40 }
 0x2e4   :  { %v215_v61 = vrot.slane %v207_v59, %v557_v40 }
 0x2e6   :  { %v216_v62 = vsel %vm176_vm0, %v215_v61, %v211_v60 }
 0x2e7   :  { %v218_v63 = vsel %vm179_vm1, %v216_v62, 0.0 }
 0x2e8   :  { %219 = vadd.xlane.f32.xlu1 %v218_v63 }
 0x375   :  { %v220_v0 = vpop.xlane.xlu1 %219 }
 0x376   :  { %v225_v1 = vrot.slane %v220_v0, %v186_v47  ;;  %v229_v2 = vrot.slane %v220_v0, %v190_v48 }
 0x378   :  { %390 = vrcp.f32 %v225_v1 }
 0x379   :  { %392 = vrcp.f32 %v229_v2 }
 0x382   :  { %v391_v3 = vpop.eup %390 }
 0x383   :  { %v233_v4 = vmul.f32 %v391_v3, %v387_v56  ;;  %v393_v5 = vpop.eup %392 }
 0x384   :  { %v235_v6 = vmul.f32 %v393_v5, %v389_v57 }
 0x385   :  { %240 = vperm.xlu0 %381, %v233_v4  }
 0x389   :  { %243 = vperm.xlu0 %381, %v235_v6  }
 0x38a   :  { %449 = shalt.err (!%p446_p6)
}
 0x38b   :  { %s450_s24 = scalar_lea.hbm %s601_s5, 32 }
 0x38c   :  { %p451_p7 = scmp.ne.s32.totalorder %s601_s5, %s450_s24  ;;  %p454_p8 = scmp.lt.u32.totalorder %s450_s24, %s601_s5 }
 0x38e   :  { %p456_p9 = pnand %p454_p8, %p451_p7 }
 0x390   :  { %459 = shalt.err (!%p456_p9)
}
 0x391   :  { %275 = dma.vmem_to_hbm [thread:$0]  %s273_s3, 32, %s601_s5, [#allocation9]  }
 0x392   :  { %s496_s6 = smov [#allocation7]  }
 0x393   :  { %s262_s7 = sshll.u32 %s496_s6, 4  ;;  %s263_s7 = int_to_ptr.vmem [resolvable:$true] %s262_s7 }
 0x394   :  { %s460_s8 = scalar_lea.vmem %s263_s7, 32  ;;  %p465_p11 = scmp.lt.s32.totalorder %s263_s7, %s263_s7 }
 0x395   :  { %p461_p10 = scmp.ne.s32.totalorder %s263_s7, %s460_s8  ;;  %p466_p12 = scmp.lt.s32.totalorder %s460_s8, %s460_s8 }
 0x397   :  { %p467_p13 = por %p466_p12, %p465_p11 }
 0x399   :  { %p468_p0 = pnand %p467_p13, %p461_p10 }
 0x404   :  { %v241_v7 = vpop.permute.xlu0 %240 }
 0x405   :  { %v248_v9 = vrot.slane %v241_v7, %v557_v40 }
 0x408   :  { %v244_v8 = vpop.permute.xlu0 %243 }
 0x409   :  { %v252_v10 = vrot.slane %v244_v8, %v557_v40 }
 0x40b   :  { %v253_v11 = vsel %vm176_vm0, %v252_v10, %v248_v9 }
 0x40c   :  { %255 = vst.msk [vmem:[#allocation7] sm:$0x3] %vm179_vm1, %v253_v11 }
 0x40d   :  { %471 = shalt.err (!%p468_p0)
}
 0x40e   :  { %s472_s10 = scalar_lea.hbm %s600_s4, 32 }
 0x40f   :  { %p473_p1 = scmp.ne.s32.totalorder %s600_s4, %s472_s10  ;;  %p476_p2 = scmp.lt.u32.totalorder %s472_s10, %s600_s4 }
 0x411   :  { %p478_p3 = pnand %p476_p2, %p473_p1 }
 0x413   :  { %481 = shalt.err (!%p478_p3)
}
 0x414   :  { %265 = dma.vmem_to_hbm [thread:$0]  %s263_s7, 32, %s600_s4, [#allocation4]  }
 0x415   :  { %486 = dma.done.wait [#allocation4], 32  }
 0x416   :  { %487 = vsyncadd [#allocation4], 4294967264 }
 0x417   :  { %488 = dma.done.wait [#allocation9], 32  }
 0x418   :  { %489 = vsyncadd [#allocation9], 4294967264 }
 0x419   :  { %282 = vsyncpa [#allocation3], 1 }
 0x41a   :  { %283 = vsyncpa [#allocation6], 1 }
 0x41b   :  { %284 = vsyncpa [#allocation4], 1 }
 0x41c   :  { %285 = vsyncpa [#allocation9], 1 }

</bundles_post_ra>
